<compile_context>
chip_gen: v7x
topology: tpu7x:2x2x1
jax: 0.10.0
libtpu: 0.0.40
codegen_flags: <defaults>
</compile_context>

<pallas_src>
import jax
import jax.numpy as jnp
from jax.experimental import pallas as pl
from jax.experimental.pallas import tpu as pltpu


def highway_kernel(x_ref, w_ref, b_ref, o_ref):
    x = x_ref[...]                      # (tm, Dp) in activation dtype (bf16 stays bf16)
    d = x.shape[-1]                     # padded feature width (multiple of 128)

    # One fused MXU pass: (tm, Dp) x (Dp, 2*Dp) -> f32 accumulator, then add biases.
    ht = jnp.dot(x, w_ref[...], preferred_element_type=jnp.float32) + b_ref[...]

    # Split at a lane-tile boundary (Dp is a multiple of 128 -> no relayout).
    h = jnp.maximum(ht[:, :d], 0.0)     # relu branch
    t = jax.nn.sigmoid(ht[:, d:])       # transform gate (EUP exp)

    xf = x.astype(jnp.float32)
    # Highway mix as a single FMA-shaped expression: x + t*(h - x)
    o_ref[...] = (xf + t * (h - xf)).astype(o_ref.dtype)


def _round_up(v, m):
    return (v + m - 1) // m * m


def highway(x, w_h, b_h, w_t, b_t, *, tile_m=256):
    """x: (B, D); w_*: (D, D) stored as in_size x out_size; b_*: (D,)."""
    B, D = x.shape
    assert w_h.shape == (D, D) and w_t.shape == (D, D), "Highway needs in_size == out_size"

    # Lane-dense feature width and batch tile sized for the MXU / pipeline overhead.
    Dp = _round_up(D, 128)
    tm = min(tile_m, _round_up(B, 8))
    Bp = _round_up(B, tm)

    # Fuse weights/biases: columns [0, Dp) -> H branch, [Dp, 2*Dp) -> T gate.
    # Weights are cast to the activation dtype so bf16 inputs get full bf16 MXU rate.
    w = jnp.zeros((Dp, 2 * Dp), dtype=x.dtype)
    w = w.at[:D, :D].set(w_h.astype(x.dtype))
    w = w.at[:D, Dp:Dp + D].set(w_t.astype(x.dtype))
    b = jnp.zeros((1, 2 * Dp), dtype=jnp.float32)
    b = b.at[0, :D].set(b_h.astype(jnp.float32))
    b = b.at[0, Dp:Dp + D].set(b_t.astype(jnp.float32))

    # Zero-pad activations to (Bp, Dp); padded rows/cols are sliced off at the end.
    xp = x
    if (Bp, Dp) != (B, D):
        xp = jnp.zeros((Bp, Dp), dtype=x.dtype).at[:B, :D].set(x)

    grid = (Bp // tm,)
    flops = 2 * Bp * Dp * (2 * Dp)
    bytes_accessed = (xp.size * xp.dtype.itemsize
                      + w.size * w.dtype.itemsize
                      + b.size * b.dtype.itemsize
                      + Bp * Dp * xp.dtype.itemsize)

    # Note: the weight/bias blocks use a constant index_map, so the pipeline keeps
    # them resident in VMEM across all grid steps (no re-DMA per iteration). For
    # very large D on v7x (64 MiB VMEM), pass bf16 weights to halve their footprint.
    out = pl.pallas_call(
        highway_kernel,
        out_shape=jax.ShapeDtypeStruct((Bp, Dp), x.dtype),
        grid_spec=pltpu.PrefetchScalarGridSpec(
            num_scalar_prefetch=0,
            grid=grid,
            in_specs=[
                pl.BlockSpec((tm, Dp), lambda i: (i, 0)),        # x tile
                pl.BlockSpec((Dp, 2 * Dp), lambda i: (0, 0)),    # fused W (resident)
                pl.BlockSpec((1, 2 * Dp), lambda i: (0, 0)),     # fused bias
            ],
            out_specs=pl.BlockSpec((tm, Dp), lambda i: (i, 0)),
        ),
        compiler_params=pltpu.CompilerParams(
            dimension_semantics=("parallel",),
        ),
        cost_estimate=pl.CostEstimate(
            flops=flops,
            transcendentals=Bp * Dp,          # one exp per output element (sigmoid)
            bytes_accessed=bytes_accessed,
        ),
    )(xp, w, b)

    return out[:B, :D]


def highway_ref(x, w_h, b_h, w_t, b_t):
    h = jnp.maximum(x @ w_h + b_h, 0.0)
    t = jax.nn.sigmoid(x @ w_t + b_t)
    return h * t + x * (1.0 - t)


if __name__ == "__main__":
    key = jax.random.PRNGKey(0)
    B, D = 16, 32  # batch, in_size == out_size (Highway residual mix requires it)

    k_x, k_wh, k_wt = jax.random.split(key, 3)
    x = jax.random.normal(k_x, (B, D), dtype=jnp.float32)

    # Deterministic init mimicking nn.Linear defaults (uniform +/- 1/sqrt(in)),
    # stored transposed (in_size, out_size) for x @ W.
    bound = 1.0 / jnp.sqrt(jnp.float32(D))
    w_h = jax.random.uniform(k_wh, (D, D), jnp.float32, -bound, bound)
    w_t = jax.random.uniform(k_wt, (D, D), jnp.float32, -bound, bound)
    b_h = jnp.zeros((D,), jnp.float32)          # self.H.bias.data.zero_()
    b_t = jnp.full((D,), -1.0, jnp.float32)     # self.T.bias.data.fill_(-1)

    out = jax.block_until_ready(highway(x, w_h, b_h, w_t, b_t))

    ref = highway_ref(x, w_h, b_h, w_t, b_t)
    assert out.shape == (B, D)
    assert jnp.allclose(out, ref, atol=1e-5, rtol=1e-5), "mismatch vs reference"

    print("KERNEL_OK")
</pallas_src>

<mosaic_0001>
module attributes {stable_mosaic.version = 11 : i64} {
  func.func @highway_kernel(%arg0: i32, %arg1: memref<16x128xf32, #tpu.memory_space<vmem>>, %arg2: memref<128x256xf32, #tpu.memory_space<vmem>>, %arg3: memref<1x256xf32, #tpu.memory_space<vmem>>, %arg4: memref<16x128xf32, #tpu.memory_space<vmem>>) attributes {dimension_semantics = [#tpu.dimension_semantics<parallel>], iteration_bounds = array<i64: 1>, scalar_prefetch = 0 : i64, scratch_operands = 0 : i64, tpu.core_type = #tpu.core_type<tc>, window_params = [{transform_indices = @transform_0, window_bounds = array<i64: 16, 128>}, {pipeline_mode = #tpu.pipeline_mode<synchronous>, transform_indices = @transform_1, window_bounds = array<i64: 128, 256>}, {pipeline_mode = #tpu.pipeline_mode<synchronous>, transform_indices = @transform_2, window_bounds = array<i64: 1, 256>}, {transform_indices = @transform_3, window_bounds = array<i64: 16, 128>}]} {
    %c0 = arith.constant 0 : index
    %c0_0 = arith.constant 0 : index
    %0 = vector.load %arg1[%c0, %c0_0] : memref<16x128xf32, #tpu.memory_space<vmem>>, vector<16x128xf32>
    %c0_1 = arith.constant 0 : index
    %c0_2 = arith.constant 0 : index
    %1 = vector.load %arg2[%c0_1, %c0_2] : memref<128x256xf32, #tpu.memory_space<vmem>>, vector<128x256xf32>
    %cst = arith.constant dense<0.000000e+00> : vector<16x256xf32>
    %2 = tpu.matmul %0, %1, %cst {dimension_numbers = #tpu.dot_dimension_numbers<[1], [0], [0], [1], [0, 0, 1, 1], [], []>} : vector<16x128xf32>, vector<128x256xf32>, vector<16x256xf32> -> vector<16x256xf32>
    %c0_3 = arith.constant 0 : index
    %c0_4 = arith.constant 0 : index
    %3 = vector.load %arg3[%c0_3, %c0_4] : memref<1x256xf32, #tpu.memory_space<vmem>>, vector<1x256xf32>
    %4 = vector.broadcast %3 : vector<1x256xf32> to vector<16x256xf32>
    %5 = arith.addf %2, %4 : vector<16x256xf32>
    %6 = vector.extract_strided_slice %5 {offsets = [0, 0], sizes = [16, 128], strides = [1, 1]} : vector<16x256xf32> to vector<16x128xf32>
    %cst_5 = arith.constant 0.000000e+00 : f32
    %7 = vector.broadcast %cst_5 : f32 to vector<16x128xf32>
    %8 = arith.maximumf %6, %7 : vector<16x128xf32>
    %9 = vector.extract_strided_slice %5 {offsets = [0, 128], sizes = [16, 128], strides = [1, 1]} : vector<16x256xf32> to vector<16x128xf32>
    %10 = arith.negf %9 : vector<16x128xf32>
    %11 = math.exp %10 : vector<16x128xf32>
    %cst_6 = arith.constant 1.000000e+00 : f32
    %12 = vector.broadcast %cst_6 : f32 to vector<16x128xf32>
    %13 = arith.addf %12, %11 : vector<16x128xf32>
    %14 = arith.divf %12, %13 : vector<16x128xf32>
    %15 = arith.subf %8, %0 : vector<16x128xf32>
    %16 = arith.mulf %14, %15 : vector<16x128xf32>
    %17 = arith.addf %0, %16 : vector<16x128xf32>
    %c0_7 = arith.constant 0 : index
    %c0_8 = arith.constant 0 : index
    %18 = vector.load %arg4[%c0_7, %c0_8] : memref<16x128xf32, #tpu.memory_space<vmem>>, vector<16x128xf32>
    tpu.vector_store %arg4[%c0_7, %c0_8], %17 {strides = array<i32>} : memref<16x128xf32, #tpu.memory_space<vmem>>, vector<16x128xf32>,
    return
  }
  func.func @transform_0(%arg0: i32) -> (i32, i32) {
    %c0_i32 = arith.constant 0 : i32
    %c0_i32_0 = arith.constant 0 : i32
    return %arg0, %c0_i32 : i32, i32
  }
  func.func @transform_1(%arg0: i32) -> (i32, i32) {
    %c0_i32 = arith.constant 0 : i32
    %c0_i32_0 = arith.constant 0 : i32
    %c0_i32_1 = arith.constant 0 : i32
    return %c0_i32, %c0_i32_0 : i32, i32
  }
  func.func @transform_2(%arg0: i32) -> (i32, i32) {
    %c0_i32 = arith.constant 0 : i32
    %c0_i32_0 = arith.constant 0 : i32
    %c0_i32_1 = arith.constant 0 : i32
    return %c0_i32, %c0_i32_0 : i32, i32
  }
  func.func @transform_3(%arg0: i32) -> (i32, i32) {
    %c0_i32 = arith.constant 0 : i32
    %c0_i32_0 = arith.constant 0 : i32
    return %arg0, %c0_i32 : i32, i32
  }
}

</mosaic_0001>

<bundles_post_ra>
// kernel: tpu_custom_call.1
= control target key start
LH: loop header
LB: loop body
LE: loop exit
PB: predicated region body
PF: predicated region fallthrough
CT: control target
= control target key end

     0   :  { %8 = vsyncpa [#allocation3], 0  ;;  %s417_s0 = inlined_call_operand.hbm [shape: f32[16,128], index: 0, kind: input, shape index: {}]   ;;  %s418_s1 = inlined_call_operand.hbm [shape: f32[128,256], index: 1, kind: input, shape index: {}]   ;;  %s419_s2 = inlined_call_operand.vmem [shape: f32[1,256], index: 2, kind: input, shape index: {}]   ;;  %s420_s3 = inlined_call_operand.hbm [shape: f32[16,128], index: 3, kind: output, shape index: {}]  }
   0x1   :  { %9 = vsyncpa [#allocation6], 0 }
   0x2   :  { %10 = vsyncpa [#allocation4], 0  ;;  %s344_s12 = smov [#allocation2]   ;;  %s272_s16 = scalar_lea.hbm %s417_s0, 256 }
   0x3   :  { %s16_s13 = sshll.u32 %s344_s12, 4  ;;  %p273_p0 = scmp.ne.s32.totalorder %s417_s0, %s272_s16  ;;  %s17_s13 = int_to_ptr.vmem [resolvable:$true] %s16_s13 }
   0x4   :  { %p276_p1 = scmp.lt.u32.totalorder %s272_s16, %s417_s0 }
   0x6   :  { %p278_p2 = pnand %p276_p1, %p273_p0 }
   0x8   :  { %281 = shalt.err (!%p278_p2)
}
   0x9   :  { %s282_s21 = scalar_lea.vmem %s17_s13, 256  ;;  %p287_p4 = scmp.lt.s32.totalorder %s17_s13, %s17_s13 }
   0xa   :  { %p283_p3 = scmp.ne.s32.totalorder %s17_s13, %s282_s21  ;;  %p288_p5 = scmp.lt.s32.totalorder %s282_s21, %s282_s21 }
   0xc   :  { %p289_p6 = por %p288_p5, %p287_p4 }
   0xe   :  { %p290_p7 = pnand %p289_p6, %p283_p3 }
  0x10   :  { %293 = shalt.err (!%p290_p7)
}
  0x11   :  { %s345_s22 = smov 128   ;;  %s346_s23 = smov 8  }
  0x12   :  { %22 = dma.hbm_to_vmem [thread:$0]  %s417_s0, 256, %s17_s13, [#allocation3], %s345_s22, %s345_s22, %s346_s23  }
  0x13   :  { %s347_s26 = smov [#allocation5]   ;;  %s294_s30 = scalar_lea.hbm %s418_s1, 4096 }
  0x14   :  { %s28_s27 = sshll.u32 %s347_s26, 4  ;;  %p295_p8 = scmp.ne.s32.totalorder %s418_s1, %s294_s30  ;;  %s29_s27 = int_to_ptr.vmem [resolvable:$true] %s28_s27 }
  0x15   :  { %p298_p9 = scmp.lt.u32.totalorder %s294_s30, %s418_s1 }
  0x17   :  { %p300_p10 = pnand %p298_p9, %p295_p8 }
  0x19   :  { %303 = shalt.err (!%p300_p10)
}
  0x1a   :  { %s304_s8 = scalar_lea.vmem %s29_s27, 4096  ;;  %p309_p12 = scmp.lt.s32.totalorder %s29_s27, %s29_s27 }
  0x1b   :  { %p305_p11 = scmp.ne.s32.totalorder %s29_s27, %s304_s8  ;;  %p310_p13 = scmp.lt.s32.totalorder %s304_s8, %s304_s8 }
  0x1d   :  { %p311_p0 = por %p310_p13, %p309_p12 }
  0x1f   :  { %p312_p1 = pnand %p311_p0, %p305_p11 }
  0x21   :  { %315 = shalt.err (!%p312_p1)
}
  0x22   :  { %s348_s0 = smov 256   ;;  %s349_s9 = smov 16  }
  0x23   :  { %34 = dma.hbm_to_vmem [thread:$0]  %s418_s1, 4096, %s29_s27, [#allocation6], %s348_s0, %s348_s0, %s349_s9  }
  0x24   :  { %338 = dma.done.wait [#allocation3], 256  }
  0x25   :  { %339 = vsyncadd [#allocation3], 4294967040 }
  0x26   :  { %340 = dma.done.wait [#allocation6], 4096  }
  0x27   :  { %341 = vsyncadd [#allocation6], 4294963200  ;;  %v350_v0 = vmov 0.0   ;;  %v46_v1 = vld [vmem:[#allocation5 + $0x8] sm:$0xff]  ;;  %v48_v2 = vld [vmem:[#allocation5 + $0x18] sm:$0xff]  ;;  %v79_v51 = vlaneseq }
  0x28   :  { %153 = vmatprep.mubr.f32.mxu0 %v350_v0  ;;  %159 = vmatprep.mubr.f32.mxu1 %v350_v0  ;;  %v45_v3 = vld [vmem:[#allocation5] sm:$0xff]  ;;  %v208_v4 = vpack.c.bf16 %v48_v2, %v46_v1  ;;  %v47_v5 = vld [vmem:[#allocation5 + $0x10] sm:$0xff]  ;;  %v50_v6 = vld [vmem:[#allocation5 + $0x28] sm:$0xff] }
  0x29   :  { %v52_v7 = vld [vmem:[#allocation5 + $0x38] sm:$0xff]  ;;  %v210_v8 = vpack.c.bf16 %v47_v5, %v45_v3  ;;  %v49_v10 = vld [vmem:[#allocation5 + $0x20] sm:$0xff]  ;;  %v51_v11 = vld [vmem:[#allocation5 + $0x30] sm:$0xff]  ;;  %v80_v52 = vshrl.u32 %v79_v51, 7 }
  0x2a   :  { %v212_v9 = vpack.c.bf16 %v52_v7, %v50_v6  ;;  %v54_v12 = vld [vmem:[#allocation5 + $0x48] sm:$0xff]  ;;  %209 = vmatprep.subr.bf16.mxu0 %v208_v4  ;;  %240 = vmatprep.subr.bf16.mxu1 %v208_v4  ;;  %v56_v13 = vld [vmem:[#allocation5 + $0x58] sm:$0xff]  ;;  %v214_v14 = vpack.c.bf16 %v51_v11, %v49_v10  ;;  %v53_v16 = vld [vmem:[#allocation5 + $0x40] sm:$0xff] }
  0x2b   :  { %211 = vmatpush1.bf16.msra.mxu0 %v210_v8  ;;  %248 = vmatpush1.bf16.msra.mxu1 %v210_v8  ;;  %v216_v15 = vpack.c.bf16 %v56_v13, %v54_v12  ;;  %v55_v17 = vld [vmem:[#allocation5 + $0x50] sm:$0xff]  ;;  %v58_v18 = vld [vmem:[#allocation5 + $0x68] sm:$0xff]  ;;  %v60_v19 = vld [vmem:[#allocation5 + $0x78] sm:$0xff]  ;;  %v85_v53 = vsub.s32 1, %v80_v52  ;;  %v81_v0 = vsub.s32 0, %v80_v52 }
  0x2c   :  { %213 = vmatprep.subr.bf16.mxu0 %v212_v9  ;;  %241 = vmatprep.subr.bf16.mxu1 %v212_v9  ;;  %v218_v20 = vpack.c.bf16 %v55_v17, %v53_v16  ;;  %v220_v21 = vpack.c.bf16 %v60_v19, %v58_v18  ;;  %v57_v22 = vld [vmem:[#allocation5 + $0x60] sm:$0xff]  ;;  %v59_v23 = vld [vmem:[#allocation5 + $0x70] sm:$0xff]  ;;  %v62_v24 = vld [vmem:[#allocation5 + $0x88] sm:$0xff] }
  0x2d   :  { %v64_v25 = vld [vmem:[#allocation5 + $0x98] sm:$0xff]  ;;  %v222_v26 = vpack.c.bf16 %v59_v23, %v57_v22  ;;  %v61_v28 = vld [vmem:[#allocation5 + $0x80] sm:$0xff]  ;;  %v63_v29 = vld [vmem:[#allocation5 + $0x90] sm:$0xff] }
  0x2e   :  { %v224_v27 = vpack.c.bf16 %v64_v25, %v62_v24  ;;  %v66_v30 = vld [vmem:[#allocation5 + $0xa8] sm:$0xff]  ;;  %v68_v31 = vld [vmem:[#allocation5 + $0xb8] sm:$0xff]  ;;  %v226_v32 = vpack.c.bf16 %v63_v29, %v61_v28  ;;  %v65_v34 = vld [vmem:[#allocation5 + $0xa0] sm:$0xff] }
  0x2f   :  { %215 = vmatpush1.bf16.msra.mxu0 %v214_v14  ;;  %249 = vmatpush1.bf16.msra.mxu1 %v214_v14  ;;  %v228_v33 = vpack.c.bf16 %v68_v31, %v66_v30  ;;  %v67_v35 = vld [vmem:[#allocation5 + $0xb0] sm:$0xff]  ;;  %v70_v36 = vld [vmem:[#allocation5 + $0xc8] sm:$0xff]  ;;  %v72_v37 = vld [vmem:[#allocation5 + $0xd8] sm:$0xff] }
  0x30   :  { %217 = vmatprep.subr.bf16.mxu0 %v216_v15  ;;  %242 = vmatprep.subr.bf16.mxu1 %v216_v15  ;;  %v230_v38 = vpack.c.bf16 %v67_v35, %v65_v34  ;;  %v232_v39 = vpack.c.bf16 %v72_v37, %v70_v36  ;;  %v69_v40 = vld [vmem:[#allocation5 + $0xc0] sm:$0xff]  ;;  %v71_v41 = vld [vmem:[#allocation5 + $0xd0] sm:$0xff]  ;;  %v74_v42 = vld [vmem:[#allocation5 + $0xe8] sm:$0xff] }
  0x31   :  { %v76_v43 = vld [vmem:[#allocation5 + $0xf8] sm:$0xff]  ;;  %v234_v44 = vpack.c.bf16 %v71_v41, %v69_v40  ;;  %v73_v46 = vld [vmem:[#allocation5 + $0xe0] sm:$0xff]  ;;  %v75_v47 = vld [vmem:[#allocation5 + $0xf0] sm:$0xff] }
  0x32   :  { %v236_v45 = vpack.c.bf16 %v76_v43, %v74_v42  ;;  %v238_v48 = vpack.c.bf16 %v75_v47, %v73_v46  ;;  %v43_v49 = vld [vmem:[#allocation2] sm:$0xff]  ;;  %v44_v50 = vld [vmem:[#allocation2 + $0x8] sm:$0xff] }
  0x33   :  { %219 = vmatpush1.bf16.msra.mxu0 %v218_v20  ;;  %250 = vmatpush1.bf16.msra.mxu1 %v218_v20  ;;  %v77_v54 = vld [vmem:[%s419_s2] sm:$0x3]  ;;  %s351_s2 = smov [#allocation7]  }
  0x34   :  { %221 = vmatprep.subr.bf16.mxu0 %v220_v21  ;;  %243 = vmatprep.subr.bf16.mxu1 %v220_v21  ;;  %v86_v55 = vrot.slane %v77_v54, %v85_v53  ;;  %v82_v2 = vrot.slane %v77_v54, %v81_v0  ;;  %s193_s13 = sshll.u32 %s351_s2, 4  ;;  %s194_s13 = int_to_ptr.vmem [resolvable:$true] %s193_s13 }
  0x35   :  { %s316_s14 = scalar_lea.vmem %s194_s13, 256  ;;  %p321_p3 = scmp.lt.s32.totalorder %s194_s13, %s194_s13 }
  0x36   :  { %p317_p2 = scmp.ne.s32.totalorder %s194_s13, %s316_s14  ;;  %p322_p4 = scmp.lt.s32.totalorder %s316_s14, %s316_s14 }
  0x37   :  { %223 = vmatpush1.bf16.msra.mxu0 %v222_v26  ;;  %251 = vmatpush1.bf16.msra.mxu1 %v222_v26 }
  0x38   :  { %225 = vmatprep.subr.bf16.mxu0 %v224_v27  ;;  %244 = vmatprep.subr.bf16.mxu1 %v224_v27  ;;  %p323_p5 = por %p322_p4, %p321_p3 }
  0x3a   :  { %p324_p6 = pnand %p323_p5, %p317_p2 }
  0x3b   :  { %227 = vmatpush1.bf16.msra.mxu0 %v226_v32  ;;  %252 = vmatpush1.bf16.msra.mxu1 %v226_v32 }
  0x3c   :  { %229 = vmatprep.subr.bf16.mxu0 %v228_v33  ;;  %245 = vmatprep.subr.bf16.mxu1 %v228_v33 }
  0x3f   :  { %231 = vmatpush1.bf16.msra.mxu0 %v230_v38  ;;  %253 = vmatpush1.bf16.msra.mxu1 %v230_v38 }
  0x40   :  { %233 = vmatprep.subr.bf16.mxu0 %v232_v39  ;;  %246 = vmatprep.subr.bf16.mxu1 %v232_v39 }
  0x43   :  { %235 = vmatpush1.bf16.msra.mxu0 %v234_v44  ;;  %254 = vmatpush1.bf16.msra.mxu1 %v234_v44 }
  0x44   :  { %237 = vmatprep.subr.bf16.mxu0 %v236_v45  ;;  %247 = vmatprep.subr.bf16.mxu1 %v236_v45 }
  0x47   :  { %239 = vmatpush1.bf16.msra.mxu0 %v238_v48  ;;  %255 = vmatpush1.bf16.msra.mxu1 %v238_v48 }
  0x4a   :  { %154 = vmatmul.mubr.f32.vlgmr.msra.gmra.mrb[0].mxu0 %v43_v49  ;;  %160 = vmatmul.mubr.f32.vlgmr.msra.gmra.mrb[0].mxu1 %v44_v50 }
 0x11d   :  { %v155_v56 = vpop.f32.mrb[0].mxu0  ;;  %v161_v57 = vpop.f32.mrb[0].mxu1 }
 0x11e   :  { %v157_v58 = vpop.f32.mrb[1].mxu0  ;;  %v163_v59 = vpop.f32.mrb[1].mxu1  ;;  %v156_v6 = vadd.f32 %v155_v56, %v82_v2  ;;  %v162_v7 = vadd.f32 %v161_v57, %v82_v2 }
 0x11f   :  { %v158_v60 = vadd.f32 %v157_v58, %v86_v55  ;;  %v164_v61 = vadd.f32 %v163_v59, %v86_v55 }
 0x120   :  { %v166_v8 = vmax.f32 %v156_v6, 0.0  ;;  %v167_v9 = vmax.f32 %v162_v7, 0.0 }
 0x121   :  { %v206_v62 = vmul.f32 -1.442695, %v158_v60  ;;  %v207_v63 = vmul.f32 -1.442695, %v164_v61 }
 0x122   :  { %v180_v10 = vsub.f32 %v166_v8, %v43_v49  ;;  %v181_v12 = vsub.f32 %v167_v9, %v44_v50 }
 0x123   :  { %264 = vpow2.f32 %v206_v62 }
 0x124   :  { %266 = vpow2.f32 %v207_v63 }
 0x12d   :  { %v265_v1 = vpop.eup %264 }
 0x12e   :  { %v267_v3 = vpop.eup %266  ;;  %v174_v4 = vadd.f32 1.0, %v265_v1 }
 0x12f   :  { %v175_v5 = vadd.f32 1.0, %v267_v3 }
 0x130   :  { %268 = vrcp.f32 %v174_v4 }
 0x131   :  { %270 = vrcp.f32 %v175_v5 }
 0x13a   :  { %v269_v11 = vpop.eup %268 }
 0x13b   :  { %v271_v13 = vpop.eup %270  ;;  %v182_v14 = vmul.f32 %v269_v11, %v180_v10 }
 0x13c   :  { %v183_v15 = vmul.f32 %v271_v13, %v181_v12 }
 0x13d   :  { %v184_v16 = vadd.f32 %v182_v14, %v43_v49 }
 0x13e   :  { %v185_v17 = vadd.f32 %v183_v15, %v44_v50 }
 0x13f   :  { %186 = vst [vmem:[#allocation7] sm:$0xff] %v184_v16 }
 0x140   :  { %187 = vst [vmem:[#allocation7 + $0x8] sm:$0xff] %v185_v17 }
 0x141   :  { %327 = shalt.err (!%p324_p6)
}
 0x142   :  { %s328_s17 = scalar_lea.hbm %s420_s3, 256 }
 0x143   :  { %p329_p7 = scmp.ne.s32.totalorder %s420_s3, %s328_s17  ;;  %p332_p8 = scmp.lt.u32.totalorder %s328_s17, %s420_s3 }
 0x145   :  { %p334_p9 = pnand %p332_p8, %p329_p7 }
 0x147   :  { %337 = shalt.err (!%p334_p9)
}
 0x148   :  { %199 = dma.vmem_to_hbm [thread:$0]  %s194_s13, 256, %s420_s3, [#allocation4], %s345_s22, %s345_s22, %s346_s23  }
 0x149   :  { %342 = dma.done.wait [#allocation4], 256  }
 0x14a   :  { %343 = vsyncadd [#allocation4], 4294967040 }
 0x14b   :  { %203 = vsyncpa [#allocation3], 1 }
 0x14c   :  { %204 = vsyncpa [#allocation6], 1 }
 0x14d   :  { %205 = vsyncpa [#allocation4], 1 }

</bundles_post_ra>
